<compile_context>
chip_gen: v7x
topology: tpu7x:2x2x1
jax: 0.10.0
libtpu: 0.0.40
codegen_flags: <defaults>
</compile_context>

<pallas_src>
import functools

import jax
import jax.numpy as jnp
import numpy as np
from jax import lax
from jax.experimental import pallas as pl
from jax.experimental.pallas import tpu as pltpu


class Ranges:
    """Mirrors the `ranges` argument of the PyTorch YoloLoss module."""

    def __init__(self, num_classes):
        self.objectness = slice(0, 1)
        self.size = slice(1, 3)
        self.offset = slice(3, 5)
        self.classes = slice(5, 5 + num_classes)
        self.num_channels = 5 + num_classes


SIZE_SCALE = 1.25
OFFSET_SCALE = 2.25
CLASS_SCALE = 1.0
FOCAL_ALPHA = 0.25
FOCAL_EPS = 1e-8
OBJ_WEIGHT = 1.5


def _yolo_loss_kernel(x_ref, y_ref, acc_ref, *,
                      o0, s0, s1, f0, f1, c0, c1,
                      tn, tiles_per_shard, m_valid, m_padded,
                      shard_axis, red_axis):
    """Process one (C, tn) channel-major tile of output/label.

    acc_ref block: (1, acc_rows, tn) f32, resident across the reduction axis:
      row 0                : 1.5 * focal(objectness)
      rows 1 .. 1+n_box-1  : lab_obj * [1.25,1.25,2.25,2.25]^T * |d box|
      next row             : lab_obj * (-output[argmax(label classes)])
      remaining rows       : zero
    """
    j = pl.program_id(red_axis)

    @pl.when(j == 0)
    def _():
        acc_ref[...] = jnp.zeros_like(acc_ref)

    # TODO(synk): on v6e/v7x the |x-y| and class compare/select math could stay
    # in bf16 (bf16 VALU exists there); kept in f32 for portability to v5e.
    x_obj = x_ref[o0:o0 + 1, :].astype(jnp.float32)   # (1, tn)
    y_obj = y_ref[o0:o0 + 1, :].astype(jnp.float32)   # (1, tn)

    # ---- focal (objectness) loss -------------------------------------------
    x1 = jnp.clip(x_obj, FOCAL_EPS, 1.0 - FOCAL_EPS)
    x2 = jnp.clip(1.0 - x_obj, FOCAL_EPS, 1.0 - FOCAL_EPS)
    t1 = 1.0 - x1
    t2 = 1.0 - x2
    focal = -((1.0 - FOCAL_ALPHA) * y_obj * (t1 * t1) * jnp.log(x1)
              + FOCAL_ALPHA * (1.0 - y_obj) * (t2 * t2) * jnp.log(x2))
    obj_terms = OBJ_WEIGHT * focal

    # ---- size + offset L1 losses, fused into one 4-row slab -----------------
    n_size = s1 - s0
    n_off = f1 - f0
    n_box = n_size + n_off
    if s1 == f0:  # static: channels are contiguous -> single full-slab op
        box_terms = y_obj * jnp.abs(
            x_ref[s0:f1, :].astype(jnp.float32)
            - y_ref[s0:f1, :].astype(jnp.float32))
        row = lax.broadcasted_iota(jnp.int32, (n_box, 1), 0)
        box_terms = box_terms * jnp.where(row < n_size, SIZE_SCALE, OFFSET_SCALE)
        acc_ref[0, 1:1 + n_box, :] += box_terms
    else:  # fallback for a non-contiguous ranges layout
        size_terms = (SIZE_SCALE * y_obj) * jnp.abs(
            x_ref[s0:s1, :].astype(jnp.float32)
            - y_ref[s0:s1, :].astype(jnp.float32))
        off_terms = (OFFSET_SCALE * y_obj) * jnp.abs(
            x_ref[f0:f1, :].astype(jnp.float32)
            - y_ref[f0:f1, :].astype(jnp.float32))
        acc_ref[0, 1:1 + n_size, :] += size_terms
        acc_ref[0, 1 + n_size:1 + n_box, :] += off_terms

    # ---- class NLL loss: first-occurrence argmax + gather on the full slab ---
    # Cross-sublane reductions (max / min / sum over the class axis) run on the
    # XLU, replacing the previous ~5*NC VPU ops on 1/8-full vregs.
    nc = c1 - c0
    lab_slab = y_ref[c0:c1, :].astype(jnp.float32)     # (nc, tn)
    out_slab = x_ref[c0:c1, :].astype(jnp.float32)     # (nc, tn)
    max_lab = jnp.max(lab_slab, axis=0, keepdims=True)                 # (1, tn)
    rows_f = lax.broadcasted_iota(jnp.int32, (nc, tn), 0).astype(jnp.float32)
    # first occurrence of the max (matches torch/jnp argmax semantics)
    first_idx = jnp.min(jnp.where(lab_slab == max_lab, rows_f, float(nc)),
                        axis=0, keepdims=True)                          # (1, tn)
    best_out = jnp.sum(jnp.where(rows_f == first_idx, out_slab, 0.0),
                       axis=0, keepdims=True)                           # (1, tn)
    cls_terms = (CLASS_SCALE * y_obj) * (-best_out)
    acc_ref[0, 1 + n_box:1 + n_box + 1, :] += cls_terms

    # ---- objectness accumulate; padding mask only on tiles that need it ------
    if m_padded == m_valid:
        acc_ref[0, 0:1, :] += obj_terms
    else:
        shard = pl.program_id(shard_axis) if shard_axis is not None else 0
        base = (shard * tiles_per_shard + j) * tn
        has_pad = base + tn > m_valid

        @pl.when(jnp.logical_not(has_pad))
        def _():
            acc_ref[0, 0:1, :] += obj_terms

        @pl.when(has_pad)
        def _():
            lane = lax.broadcasted_iota(jnp.int32, (1, tn), 1)
            acc_ref[0, 0:1, :] += jnp.where(base + lane < m_valid, obj_terms, 0.0)


def _default_num_shards():
    """2 shards only on 2-TensorCore chips (v7x); 1 elsewhere."""
    try:
        kind = jax.devices()[0].device_kind.lower()
    except Exception:
        return 1
    return 2 if "v7" in kind else 1


def yolo_loss(output, label, ranges, *, tn_max=65536, num_shards=None,
              vmem_budget_bytes=20 * 1024 * 1024):
    """Pallas implementation of YoloLoss.forward.

    output, label: [B, N, C] (PyTorch convention, any float dtype).
    Returns (loss/B, obj_loss/B, size_loss/B, offset_loss/B, class_loss/B).
    """
    B, N, C = output.shape
    assert C == ranges.num_channels
    M = B * N

    if num_shards is None:
        num_shards = _default_num_shards()

    # Channel-major [C, B*N] in the input's native dtype: every per-channel
    # slice in the kernel becomes a lane-dense row block.
    # TODO(synk): ideally the producer emits channel-major data directly so this
    # single XLA transpose pass (one extra HBM read+write) disappears as well.
    x_cm = jnp.transpose(output, (2, 0, 1)).reshape(C, M)
    y_cm = jnp.transpose(label, (2, 0, 1)).reshape(C, M)

    n_size = ranges.size.stop - ranges.size.start
    n_off = ranges.offset.stop - ranges.offset.start
    rows_used = 1 + n_size + n_off + 1
    acc_rows = ((rows_used + 7) // 8) * 8        # sublane-aligned accumulator

    # --- tn sizing: big enough to amortize the ~0.35 us per-step overhead,
    # --- bounded by a conservative VMEM budget that also holds on v7x (64 MiB).
    c_pad = ((C + 7) // 8) * 8
    # 2 inputs x 2 buffers x c_pad rows + (2x) accumulator + ~2*c_pad rows temps
    bytes_per_col = 4 * (6 * c_pad + 2 * acc_rows)
    tn_cap = max(128, (vmem_budget_bytes // bytes_per_col) // 128 * 128)

    per_shard = -(-M // num_shards)
    tn = min(tn_cap, tn_max, max(128, -(-per_shard // 128) * 128))
    tn = max(128, (tn // 128) * 128)
    tiles_per_shard = -(-per_shard // tn)
    m_pad = num_shards * tiles_per_shard * tn
    if m_pad != M:
        # jnp.pad zero-fills: label objectness == 0 in the pad region kills the
        # size/offset/class terms there; the focal term is masked in-kernel.
        x_cm = jnp.pad(x_cm, ((0, 0), (0, m_pad - M)))
        y_cm = jnp.pad(y_cm, ((0, 0), (0, m_pad - M)))

    kernel = functools.partial(
        _yolo_loss_kernel,
        o0=ranges.objectness.start,
        s0=ranges.size.start, s1=ranges.size.stop,
        f0=ranges.offset.start, f1=ranges.offset.stop,
        c0=ranges.classes.start, c1=ranges.classes.stop,
        tn=tn, tiles_per_shard=tiles_per_shard, m_valid=M, m_padded=m_pad,
        shard_axis=0 if num_shards > 1 else None,
        red_axis=1 if num_shards > 1 else 0)

    if num_shards > 1:
        # TODO(synk): on v7x, verify in a trace that both TensorCores are busy;
        # if not, switch this axis to pltpu.CORE_PARALLEL (grid size == cores).
        grid = (num_shards, tiles_per_shard)
        in_map = lambda s, j: (0, s * tiles_per_shard + j)
        out_map = lambda s, j: (s, 0, 0)
        semantics = ("parallel", "arbitrary")
    else:
        # Single-TC chips: one reduction axis, no extra padding, one accumulator.
        grid = (tiles_per_shard,)
        in_map = lambda j: (0, j)
        out_map = lambda j: (0, 0, 0)
        semantics = ("arbitrary",)

    acc = pl.pallas_call(
        kernel,
        out_shape=jax.ShapeDtypeStruct((num_shards, acc_rows, tn), jnp.float32),
        grid=grid,
        in_specs=[pl.BlockSpec((C, tn), in_map),
                  pl.BlockSpec((C, tn), in_map)],
        out_specs=pl.BlockSpec((1, acc_rows, tn), out_map),
        compiler_params=pltpu.CompilerParams(
            dimension_semantics=semantics,
            vmem_limit_bytes=40 * 1024 * 1024),
    )(x_cm, y_cm)

    # Tiny epilogue reduction in plain JAX over (num_shards, acc_rows, tn).
    row_sums = jnp.sum(acc, axis=(0, 2))
    obj_l = row_sums[0]
    size_l = jnp.sum(row_sums[1:1 + n_size])
    off_l = jnp.sum(row_sums[1 + n_size:1 + n_size + n_off])
    cls_l = row_sums[1 + n_size + n_off]
    total = obj_l + size_l + off_l + cls_l
    b = float(B)
    return (total / b, obj_l / b, size_l / b, off_l / b, cls_l / b)


def yolo_loss_reference(output, label, r):
    """Pure-jnp reference matching the PyTorch semantics."""
    lab_obj = label[:, :, r.objectness]          # (B, N, 1)
    obj = output[:, :, r.objectness]
    y = lab_obj[..., None]
    x = obj[..., None]
    y_cat = jnp.concatenate([(1 - FOCAL_ALPHA) * y, FOCAL_ALPHA * (1 - y)], -1)
    x_cat = jnp.clip(jnp.concatenate([x, 1 - x], -1), FOCAL_EPS, 1 - FOCAL_EPS)
    obj_loss = OBJ_WEIGHT * jnp.sum(-y_cat * (1 - x_cat) ** 2 * jnp.log(x_cat))
    size_loss = jnp.sum(
        SIZE_SCALE * lab_obj * jnp.abs(output[:, :, r.size] - label[:, :, r.size]))
    off_loss = jnp.sum(
        OFFSET_SCALE * lab_obj
        * jnp.abs(output[:, :, r.offset] - label[:, :, r.offset]))
    cls_idx = jnp.argmax(label[:, :, r.classes], axis=-1)
    nll = -jnp.take_along_axis(output[:, :, r.classes],
                               cls_idx[..., None], axis=-1)[..., 0]
    cls_loss = CLASS_SCALE * jnp.sum(lab_obj[..., 0] * nll)
    batch = label.shape[0]
    total = (obj_loss + size_loss + off_loss + cls_loss) / batch
    return (total, obj_loss / batch, size_loss / batch,
            off_loss / batch, cls_loss / batch)


if __name__ == "__main__":
    num_classes = 3
    ranges = Ranges(num_classes)
    B, N, C = 2, 256, ranges.num_channels  # C = 8

    key = jax.random.PRNGKey(0)
    k_out, k_lab_obj, k_lab_box, k_lab_cls = jax.random.split(key, 4)

    # network output: arbitrary floats; objectness-like values in (0, 1)
    output = jax.random.uniform(k_out, (B, N, C), dtype=jnp.float32,
                                minval=0.01, maxval=0.99)
    # label: objectness mask in {0, 1}, boxes uniform, one-hot classes
    lab_obj = (jax.random.uniform(k_lab_obj, (B, N, 1)) > 0.7).astype(jnp.float32)
    lab_box = jax.random.uniform(k_lab_box, (B, N, 4), dtype=jnp.float32)
    lab_cls = jax.nn.one_hot(
        jax.random.randint(k_lab_cls, (B, N), 0, num_classes), num_classes,
        dtype=jnp.float32)
    label = jnp.concatenate([lab_obj, lab_box, lab_cls], axis=-1)

    # Exercise both grid structures (1-D reduction grid and sharded 2-D grid).
    for shards in (None, 2):
        result = yolo_loss(output, label, ranges, num_shards=shards)
        result = jax.block_until_ready(result)
        ref = yolo_loss_reference(output, label, ranges)
        for got, want in zip(result, ref):
            np.testing.assert_allclose(np.asarray(got), np.asarray(want),
                                       rtol=1e-5, atol=1e-4)

    print("KERNEL_OK")
</pallas_src>

<mosaic_0001>
module attributes {stable_mosaic.version = 11 : i64} {
  func.func @_yolo_loss_kernel(%arg0: i32, %arg1: memref<8x512xf32, #tpu.memory_space<vmem>>, %arg2: memref<8x512xf32, #tpu.memory_space<vmem>>, %arg3: memref<1x8x512xf32, #tpu.memory_space<vmem>>) attributes {dimension_semantics = [#tpu.dimension_semantics<arbitrary>], iteration_bounds = array<i64: 1>, scalar_prefetch = 0 : i64, scratch_operands = 0 : i64, tpu.core_type = #tpu.core_type<tc>, window_params = [{transform_indices = @transform_0, window_bounds = array<i64: 8, 512>}, {transform_indices = @transform_1, window_bounds = array<i64: 8, 512>}, {pipeline_mode = #tpu.pipeline_mode<synchronous>, transform_indices = @transform_2, window_bounds = array<i64: 1, 8, 512>}]} {
    %c0_i32 = arith.constant 0 : i32
    %0 = arith.cmpi eq, %arg0, %c0_i32 : i32
    %1 = arith.extui %0 : i1 to i32
    %c0_i32_0 = arith.constant 0 : i32
    %2 = arith.cmpi ne, %1, %c0_i32_0 : i32
    scf.if %2 {
      %cst_48 = arith.constant 0.000000e+00 : f32
      %93 = vector.broadcast %cst_48 : f32 to vector<1x8x512xf32>
      %c0_49 = arith.constant 0 : index
      %c0_50 = arith.constant 0 : index
      %c0_51 = arith.constant 0 : index
      %94 = vector.load %arg3[%c0_49, %c0_50, %c0_51] : memref<1x8x512xf32, #tpu.memory_space<vmem>>, vector<1x8x512xf32>
      tpu.vector_store %arg3[%c0_49, %c0_50, %c0_51], %93 {strides = array<i32>} : memref<1x8x512xf32, #tpu.memory_space<vmem>>, vector<1x8x512xf32>,
    } else {
    }
    %c0 = arith.constant 0 : index
    %c0_1 = arith.constant 0 : index
    %3 = vector.load %arg1[%c0, %c0_1] : memref<8x512xf32, #tpu.memory_space<vmem>>, vector<1x512xf32>
    %c0_2 = arith.constant 0 : index
    %c0_3 = arith.constant 0 : index
    %4 = vector.load %arg2[%c0_2, %c0_3] : memref<8x512xf32, #tpu.memory_space<vmem>>, vector<1x512xf32>
    %cst = arith.constant 9.99999993E-9 : f32
    %cst_4 = arith.constant 1.000000e+00 : f32
    %5 = vector.broadcast %cst : f32 to vector<1x512xf32>
    %6 = arith.maximumf %5, %3 : vector<1x512xf32>
    %7 = vector.broadcast %cst_4 : f32 to vector<1x512xf32>
    %8 = arith.minimumf %7, %6 : vector<1x512xf32>
    %cst_5 = arith.constant 1.000000e+00 : f32
    %9 = vector.broadcast %cst_5 : f32 to vector<1x512xf32>
    %10 = arith.subf %9, %3 : vector<1x512xf32>
    %cst_6 = arith.constant 9.99999993E-9 : f32
    %cst_7 = arith.constant 1.000000e+00 : f32
    %11 = vector.broadcast %cst_6 : f32 to vector<1x512xf32>
    %12 = arith.maximumf %11, %10 : vector<1x512xf32>
    %13 = vector.broadcast %cst_7 : f32 to vector<1x512xf32>
    %14 = arith.minimumf %13, %12 : vector<1x512xf32>
    %cst_8 = arith.constant 1.000000e+00 : f32
    %15 = vector.broadcast %cst_8 : f32 to vector<1x512xf32>
    %16 = arith.subf %15, %8 : vector<1x512xf32>
    %cst_9 = arith.constant 1.000000e+00 : f32
    %17 = vector.broadcast %cst_9 : f32 to vector<1x512xf32>
    %18 = arith.subf %17, %14 : vector<1x512xf32>
    %cst_10 = arith.constant 7.500000e-01 : f32
    %19 = vector.broadcast %cst_10 : f32 to vector<1x512xf32>
    %20 = arith.mulf %19, %4 : vector<1x512xf32>
    %21 = arith.mulf %16, %16 : vector<1x512xf32>
    %22 = arith.mulf %20, %21 : vector<1x512xf32>
    %23 = math.log %8 : vector<1x512xf32>
    %24 = arith.mulf %22, %23 : vector<1x512xf32>
    %cst_11 = arith.constant 1.000000e+00 : f32
    %25 = vector.broadcast %cst_11 : f32 to vector<1x512xf32>
    %26 = arith.subf %25, %4 : vector<1x512xf32>
    %cst_12 = arith.constant 2.500000e-01 : f32
    %27 = vector.broadcast %cst_12 : f32 to vector<1x512xf32>
    %28 = arith.mulf %27, %26 : vector<1x512xf32>
    %29 = arith.mulf %18, %18 : vector<1x512xf32>
    %30 = arith.mulf %28, %29 : vector<1x512xf32>
    %31 = math.log %14 : vector<1x512xf32>
    %32 = arith.mulf %30, %31 : vector<1x512xf32>
    %33 = arith.addf %24, %32 : vector<1x512xf32>
    %cst_13 = arith.constant 0.000000e+00 : f32
    %34 = vector.broadcast %cst_13 : f32 to vector<1x512xf32>
    %35 = arith.subf %34, %33 : vector<1x512xf32>
    %cst_14 = arith.constant 1.500000e+00 : f32
    %36 = vector.broadcast %cst_14 : f32 to vector<1x512xf32>
    %37 = arith.mulf %36, %35 : vector<1x512xf32>
    %c1 = arith.constant 1 : index
    %c0_15 = arith.constant 0 : index
    %38 = vector.load %arg1[%c1, %c0_15] : memref<8x512xf32, #tpu.memory_space<vmem>>, vector<4x512xf32>
    %c1_16 = arith.constant 1 : index
    %c0_17 = arith.constant 0 : index
    %39 = vector.load %arg2[%c1_16, %c0_17] : memref<8x512xf32, #tpu.memory_space<vmem>>, vector<4x512xf32>
    %40 = arith.subf %38, %39 : vector<4x512xf32>
    %41 = math.absf %40 : vector<4x512xf32>
    %42 = vector.broadcast %4 : vector<1x512xf32> to vector<4x512xf32>
    %43 = arith.mulf %42, %41 : vector<4x512xf32>
    %44 = tpu.iota {dimensions = array<i32: 0>} : vector<4x1xi32>
    %c2_i32 = arith.constant 2 : i32
    %45 = vector.broadcast %c2_i32 : i32 to vector<4x1xi32>
    %46 = arith.cmpi slt, %44, %45 : vector<4x1xi32>
    %cst_18 = arith.constant 1.250000e+00 : f32
    %cst_19 = arith.constant 2.250000e+00 : f32
    %47 = vector.broadcast %cst_18 : f32 to vector<4x1xf32>
    %48 = vector.broadcast %cst_19 : f32 to vector<4x1xf32>
    %49 = arith.select %46, %47, %48 : vector<4x1xi1>, vector<4x1xf32>
    %50 = vector.broadcast %49 : vector<4x1xf32> to vector<4x512xf32>
    %51 = arith.mulf %43, %50 : vector<4x512xf32>
    %c0_20 = arith.constant 0 : index
    %c1_21 = arith.constant 1 : index
    %c0_22 = arith.constant 0 : index
    %52 = vector.load %arg3[%c0_20, %c1_21, %c0_22] : memref<1x8x512xf32, #tpu.memory_space<vmem>>, vector<1x4x512xf32>
    %53 = vector.shape_cast %52 : vector<1x4x512xf32> to vector<4x512xf32>
    %54 = arith.addf %53, %51 : vector<4x512xf32>
    %c0_23 = arith.constant 0 : index
    %c1_24 = arith.constant 1 : index
    %c0_25 = arith.constant 0 : index
    %55 = vector.load %arg3[%c0_23, %c1_24, %c0_25] : memref<1x8x512xf32, #tpu.memory_space<vmem>>, vector<1x4x512xf32>
    %56 = vector.shape_cast %55 : vector<1x4x512xf32> to vector<4x512xf32>
    %57 = vector.shape_cast %54 : vector<4x512xf32> to vector<1x4x512xf32>
    tpu.vector_store %arg3[%c0_23, %c1_24, %c0_25], %57 {strides = array<i32>} : memref<1x8x512xf32, #tpu.memory_space<vmem>>, vector<1x4x512xf32>,
    %c5 = arith.constant 5 : index
    %c0_26 = arith.constant 0 : index
    %58 = vector.load %arg2[%c5, %c0_26] : memref<8x512xf32, #tpu.memory_space<vmem>>, vector<3x512xf32>
    %c5_27 = arith.constant 5 : index
    %c0_28 = arith.constant 0 : index
    %59 = vector.load %arg1[%c5_27, %c0_28] : memref<8x512xf32, #tpu.memory_space<vmem>>, vector<3x512xf32>
    %cst_29 = arith.constant dense<0xFF800000> : vector<512xf32>
    %60 = vector.multi_reduction <maximumf>, %58, %cst_29 [0] : vector<3x512xf32> to vector<512xf32>
    %61 = vector.shape_cast %60 : vector<512xf32> to vector<1x512xf32>
    %62 = tpu.iota {dimensions = array<i32: 0>} : vector<3x512xi32>
    %63 = arith.sitofp %62 : vector<3x512xi32> to vector<3x512xf32>
    %64 = vector.broadcast %61 : vector<1x512xf32> to vector<3x512xf32>
    %65 = arith.cmpf oeq, %58, %64 : vector<3x512xf32>
    %cst_30 = arith.constant 3.000000e+00 : f32
    %66 = vector.broadcast %cst_30 : f32 to vector<3x512xf32>
    %67 = arith.select %65, %63, %66 : vector<3x512xi1>, vector<3x512xf32>
    %cst_31 = arith.constant dense<0x7F800000> : vector<512xf32>
    %68 = vector.multi_reduction <minimumf>, %67, %cst_31 [0] : vector<3x512xf32> to vector<512xf32>
    %69 = vector.shape_cast %68 : vector<512xf32> to vector<1x512xf32>
    %70 = vector.broadcast %69 : vector<1x512xf32> to vector<3x512xf32>
    %71 = arith.cmpf oeq, %63, %70 : vector<3x512xf32>
    %cst_32 = arith.constant 0.000000e+00 : f32
    %72 = vector.broadcast %cst_32 : f32 to vector<3x512xf32>
    %73 = arith.select %71, %59, %72 : vector<3x512xi1>, vector<3x512xf32>
    %cst_33 = arith.constant dense<0.000000e+00> : vector<512xf32>
    %74 = vector.multi_reduction <add>, %73, %cst_33 [0] : vector<3x512xf32> to vector<512xf32>
    %75 = vector.shape_cast %74 : vector<512xf32> to vector<1x512xf32>
    %cst_34 = arith.constant 1.000000e+00 : f32
    %76 = vector.broadcast %cst_34 : f32 to vector<1x512xf32>
    %77 = arith.mulf %76, %4 : vector<1x512xf32>
    %cst_35 = arith.constant 0.000000e+00 : f32
    %78 = vector.broadcast %cst_35 : f32 to vector<1x512xf32>
    %79 = arith.subf %78, %75 : vector<1x512xf32>
    %80 = arith.mulf %77, %79 : vector<1x512xf32>
    %c0_36 = arith.constant 0 : index
    %c5_37 = arith.constant 5 : index
    %c0_38 = arith.constant 0 : index
    %81 = vector.load %arg3[%c0_36, %c5_37, %c0_38] : memref<1x8x512xf32, #tpu.memory_space<vmem>>, vector<1x1x512xf32>
    %82 = vector.shape_cast %81 : vector<1x1x512xf32> to vector<1x512xf32>
    %83 = arith.addf %82, %80 : vector<1x512xf32>
    %c0_39 = arith.constant 0 : index
    %c5_40 = arith.constant 5 : index
    %c0_41 = arith.constant 0 : index
    %84 = vector.load %arg3[%c0_39, %c5_40, %c0_41] : memref<1x8x512xf32, #tpu.memory_space<vmem>>, vector<1x1x512xf32>
    %85 = vector.shape_cast %84 : vector<1x1x512xf32> to vector<1x512xf32>
    %86 = vector.shape_cast %83 : vector<1x512xf32> to vector<1x1x512xf32>
    tpu.vector_store %arg3[%c0_39, %c5_40, %c0_41], %86 {strides = array<i32>} : memref<1x8x512xf32, #tpu.memory_space<vmem>>, vector<1x1x512xf32>,
    %c0_42 = arith.constant 0 : index
    %c0_43 = arith.constant 0 : index
    %c0_44 = arith.constant 0 : index
    %87 = vector.load %arg3[%c0_42, %c0_43, %c0_44] : memref<1x8x512xf32, #tpu.memory_space<vmem>>, vector<1x1x512xf32>
    %88 = vector.shape_cast %87 : vector<1x1x512xf32> to vector<1x512xf32>
    %89 = arith.addf %88, %37 : vector<1x512xf32>
    %c0_45 = arith.constant 0 : index
    %c0_46 = arith.constant 0 : index
    %c0_47 = arith.constant 0 : index
    %90 = vector.load %arg3[%c0_45, %c0_46, %c0_47] : memref<1x8x512xf32, #tpu.memory_space<vmem>>, vector<1x1x512xf32>
    %91 = vector.shape_cast %90 : vector<1x1x512xf32> to vector<1x512xf32>
    %92 = vector.shape_cast %89 : vector<1x512xf32> to vector<1x1x512xf32>
    tpu.vector_store %arg3[%c0_45, %c0_46, %c0_47], %92 {strides = array<i32>} : memref<1x8x512xf32, #tpu.memory_space<vmem>>, vector<1x1x512xf32>,
    return
  }
  func.func @transform_0(%arg0: i32) -> (i32, i32) {
    %c0_i32 = arith.constant 0 : i32
    %c0_i32_0 = arith.constant 0 : i32
    return %c0_i32, %arg0 : i32, i32
  }
  func.func @transform_1(%arg0: i32) -> (i32, i32) {
    %c0_i32 = arith.constant 0 : i32
    %c0_i32_0 = arith.constant 0 : i32
    return %c0_i32, %arg0 : i32, i32
  }
  func.func @transform_2(%arg0: i32) -> (i32, i32, i32) {
    %c0_i32 = arith.constant 0 : i32
    %c0_i32_0 = arith.constant 0 : i32
    %c0_i32_1 = arith.constant 0 : i32
    %c0_i32_2 = arith.constant 0 : i32
    return %c0_i32, %c0_i32_0, %c0_i32_1 : i32, i32, i32
  }
}

</mosaic_0001>

<bundles_post_ra>
// kernel: tpu_custom_call.1
= control target key start
LH: loop header
LB: loop body
LE: loop exit
PB: predicated region body
PF: predicated region fallthrough
CT: control target
= control target key end

     0   :  { %7 = vsyncpa [#allocation3], 0  ;;  %s524_s0 = inlined_call_operand.hbm [shape: f32[8,512], index: 0, kind: input, shape index: {}]   ;;  %s525_s1 = inlined_call_operand.hbm [shape: f32[8,512], index: 1, kind: input, shape index: {}]   ;;  %s526_s2 = inlined_call_operand.hbm [shape: f32[1,8,512], index: 2, kind: output, shape index: {}]  }
   0x1   :  { %8 = vsyncpa [#allocation6], 0 }
   0x2   :  { %9 = vsyncpa [#allocation4], 0  ;;  %s404_s9 = smov [#allocation2]   ;;  %s405_s11 = smov [#allocation5]  }
   0x3   :  { %s16_s10 = sshll.u32 %s404_s9, 4  ;;  %s26_s12 = sshll.u32 %s405_s11, 4  ;;  %s17_s10 = int_to_ptr.vmem [resolvable:$true] %s16_s10  ;;  %s27_s12 = int_to_ptr.vmem [resolvable:$true] %s26_s12 }
   0x4   :  { %s332_s15 = scalar_lea.hbm %s524_s0, 512 }
   0x5   :  { %p333_p0 = scmp.ne.s32.totalorder %s524_s0, %s332_s15  ;;  %p336_p1 = scmp.lt.u32.totalorder %s332_s15, %s524_s0 }
   0x7   :  { %p338_p2 = pnand %p336_p1, %p333_p0 }
   0x9   :  { %341 = shalt.err (!%p338_p2)
}
   0xa   :  { %s342_s20 = scalar_lea.vmem %s17_s10, 512  ;;  %p347_p4 = scmp.lt.s32.totalorder %s17_s10, %s17_s10 }
   0xb   :  { %p343_p3 = scmp.ne.s32.totalorder %s17_s10, %s342_s20  ;;  %p348_p5 = scmp.lt.s32.totalorder %s342_s20, %s342_s20 }
   0xd   :  { %p349_p6 = por %p348_p5, %p347_p4 }
   0xf   :  { %p350_p7 = pnand %p349_p6, %p343_p3 }
  0x11   :  { %353 = shalt.err (!%p350_p7)
}
  0x12   :  { %19 = dma.hbm_to_vmem [thread:$0]  %s524_s0, 512, %s17_s10, [#allocation3]  }
  0x13   :  { %s354_s25 = scalar_lea.hbm %s525_s1, 512 }
  0x14   :  { %p355_p8 = scmp.ne.s32.totalorder %s525_s1, %s354_s25  ;;  %p358_p9 = scmp.lt.u32.totalorder %s354_s25, %s525_s1 }
  0x16   :  { %p360_p10 = pnand %p358_p9, %p355_p8 }
  0x18   :  { %363 = shalt.err (!%p360_p10)
}
  0x19   :  { %s364_s30 = scalar_lea.vmem %s27_s12, 512  ;;  %p369_p12 = scmp.lt.s32.totalorder %s27_s12, %s27_s12 }
  0x1a   :  { %p365_p11 = scmp.ne.s32.totalorder %s27_s12, %s364_s30  ;;  %p370_p13 = scmp.lt.s32.totalorder %s364_s30, %s364_s30 }
  0x1c   :  { %p371_p0 = por %p370_p13, %p369_p12 }
  0x1e   :  { %p372_p1 = pnand %p371_p0, %p365_p11 }
  0x20   :  { %375 = shalt.err (!%p372_p1)
}
  0x21   :  { %29 = dma.hbm_to_vmem [thread:$0]  %s525_s1, 512, %s27_s12, [#allocation6]  }
  0x22   :  { %398 = dma.done.wait [#allocation3], 512  }
  0x23   :  { %399 = vsyncadd [#allocation3], 4294966784 }
  0x24   :  { %400 = dma.done.wait [#allocation6], 512  }
  0x25   :  { %401 = vsyncadd [#allocation6], 4294966784  ;;  %v86_v0 = vlaneseq  ;;  %v406_v1 = vmov 0.0   ;;  %v455_v5 = vld [vmem:[#allocation5] ss:$8 sm:$0xf] }
  0x26   :  { %40 = vst [vmem:[#allocation7] sm:$0xff] %v406_v1  ;;  %41 = vst [vmem:[#allocation7 + $0x8] sm:$0xff] %v406_v1  ;;  %v69_v6 = vld [vmem:[#allocation2] sm:$0x1e]  ;;  %v407_v9 = vmov 2.25   ;;  %vm141_vm1 = vcmask 1047557  }
  0x27   :  { %42 = vst [vmem:[#allocation7 + $0x10] sm:$0xff] %v406_v1  ;;  %43 = vst [vmem:[#allocation7 + $0x18] sm:$0xff] %v406_v1  ;;  %v450_v2 = vshrl.u32 %v86_v0, 7  ;;  %v73_v8 = vld [vmem:[#allocation5] sm:$0x1e]  ;;  %vm230_vm6 = vcmask 1042432  }
  0x28   :  { %v70_v11 = vld [vmem:[#allocation2 + $0x8] sm:$0x1e]  ;;  %v77_v13 = vsub.f32 %v69_v6, %v73_v8  ;;  %v71_v16 = vld [vmem:[#allocation2 + $0x10] sm:$0x1e]  ;;  %v72_v20 = vld [vmem:[#allocation2 + $0x18] sm:$0x1e] }
  0x29   :  { %v88_v3 = vsub.s32 0, %v450_v2  ;;  %vm112_vm0 = vcmp.lt.s32.totalorder %v450_v2, 2  ;;  %v92_v4 = vsub.s32 1, %v450_v2  ;;  %v96_v7 = vsub.s32 2, %v450_v2  ;;  %v74_v15 = vld [vmem:[#allocation5 + $0x8] sm:$0x1e] }
  0x2a   :  { %v113_v10 = vsel %vm112_vm0, 1.25, %v407_v9  ;;  %v100_v12 = vsub.s32 3, %v450_v2  ;;  %v78_v17 = vsub.f32 %v70_v11, %v74_v15  ;;  %v75_v19 = vld [vmem:[#allocation5 + $0x10] sm:$0x1e]  ;;  %v81_v21 = vand.u32 2147483647, %v77_v13 }
  0x2b   :  { %v89_v14 = vrot.slane %v455_v5, %v88_v3  ;;  %v93_v18 = vrot.slane %v455_v5, %v92_v4  ;;  %v115_v22 = vrot.slane %v113_v10, 7  ;;  %v79_v23 = vsub.f32 %v71_v16, %v75_v19  ;;  %v76_v25 = vld [vmem:[#allocation5 + $0x18] sm:$0x1e]  ;;  %v463_v29 = vld [vmem:[#allocation5] sm:$0xe0]  ;;  %s409_s1 = smov [#allocation7]  }
  0x2c   :  { %v97_v24 = vrot.slane %v455_v5, %v96_v7  ;;  %v82_v26 = vand.u32 2147483647, %v78_v17  ;;  %v80_v27 = vsub.f32 %v72_v20, %v76_v25  ;;  %v101_v28 = vrot.slane %v455_v5, %v100_v12  ;;  %v465_v30 = vld [vmem:[#allocation5 + $0x8] sm:$0xe0]  ;;  %v467_v36 = vld [vmem:[#allocation5 + $0x10] sm:$0xe0] }
  0x2d   :  { %v106_v31 = vmul.f32 %v89_v14, %v81_v21  ;;  %v121_v32 = vld [vmem:[#allocation7] sm:$0x1e]  ;;  %v83_v33 = vand.u32 2147483647, %v79_v23  ;;  %v469_v37 = vld [vmem:[#allocation5 + $0x18] sm:$0xe0]  ;;  %v480_v4 = vcvt.s32.f32 %v450_v2 }
  0x2e   :  { %v107_v34 = vmul.f32 %v93_v18, %v82_v26  ;;  %v84_v35 = vand.u32 2147483647, %v80_v27  ;;  %v122_v39 = vld [vmem:[#allocation7 + $0x8] sm:$0x1e]  ;;  %v142_v41 = vsel %vm141_vm1, %v463_v29, -inf  ;;  %v149_v42 = vsel %vm141_vm1, %v465_v30, -inf }
  0x2f   :  { %v117_v38 = vmul.f32 %v115_v22, %v106_v31  ;;  %v108_v40 = vmul.f32 %v97_v24, %v83_v33  ;;  %v123_v44 = vld [vmem:[#allocation7 + $0x10] sm:$0x1e]  ;;  %v143_v46 = vrot.slane %v142_v41, 4  ;;  %v150_v47 = vrot.slane %v149_v42, 4  ;;  %v124_v50 = vld [vmem:[#allocation7 + $0x18] sm:$0x1e] }
  0x30   :  { %v118_v43 = vmul.f32 %v115_v22, %v107_v34  ;;  %v109_v45 = vmul.f32 %v101_v28, %v84_v35  ;;  %v156_v51 = vsel %vm141_vm1, %v467_v36, -inf  ;;  %v163_v52 = vsel %vm141_vm1, %v469_v37, -inf  ;;  %v44_v60 = vld [vmem:[#allocation2] ss:$8 sm:$0xf]  ;;  %s312_s4 = sshll.u32 %s409_s1, 4  ;;  %s313_s4 = int_to_ptr.vmem [resolvable:$true] %s312_s4 }
  0x31   :  { %v125_v48 = vadd.f32 %v121_v32, %v117_v38  ;;  %v119_v49 = vmul.f32 %v115_v22, %v108_v40  ;;  %v144_v55 = vmax.f32 %v142_v41, %v143_v46  ;;  %v151_v56 = vmax.f32 %v149_v42, %v150_v47  ;;  %s376_s5 = scalar_lea.vmem %s313_s4, 512  ;;  %p381_p3 = scmp.lt.s32.totalorder %s313_s4, %s313_s4 }
  0x32   :  { %v126_v53 = vadd.f32 %v122_v39, %v118_v43  ;;  %v120_v54 = vmul.f32 %v115_v22, %v109_v45  ;;  %v157_v58 = vrot.slane %v156_v51, 4  ;;  %v164_v59 = vrot.slane %v163_v52, 4  ;;  %p377_p2 = scmp.ne.s32.totalorder %s313_s4, %s376_s5  ;;  %p382_p4 = scmp.lt.s32.totalorder %s376_s5, %s376_s5 }
  0x33   :  { %129 = vst [vmem:[#allocation7] sm:$0x1e] %v125_v48  ;;  %v127_v57 = vadd.f32 %v123_v44, %v119_v49  ;;  %v145_v62 = vrot.slane %v144_v55, 2  ;;  %v152_v63 = vrot.slane %v151_v56, 2  ;;  %v46_v8 = vmax.f32 %v44_v60, 1e-08 }
  0x34   :  { %130 = vst [vmem:[#allocation7 + $0x8] sm:$0x1e] %v126_v53  ;;  %v128_v61 = vadd.f32 %v124_v50, %v120_v54  ;;  %v158_v1 = vmax.f32 %v156_v51, %v157_v58  ;;  %v165_v3 = vmax.f32 %v163_v52, %v164_v59  ;;  %v48_v9 = vsub.f32 1.0, %v44_v60  ;;  %v137_v50 = vld [vmem:[#allocation2] sm:$0xe0]  ;;  %p383_p5 = por %p382_p4, %p381_p3 }
  0x35   :  { %131 = vst [vmem:[#allocation7 + $0x10] sm:$0x1e] %v127_v57  ;;  %v146_v6 = vmax.f32 %v144_v55, %v145_v62  ;;  %v153_v7 = vmax.f32 %v151_v56, %v152_v63  ;;  %v47_v14 = vmin.f32 %v46_v8, 1.0  ;;  %v176_v18 = vrot.slane %v480_v4, 3  ;;  %v138_v51 = vld [vmem:[#allocation2 + $0x8] sm:$0xe0] }
  0x36   :  { %132 = vst [vmem:[#allocation7 + $0x18] sm:$0x1e] %v128_v61  ;;  %v159_v10 = vrot.slane %v158_v1, 2  ;;  %v166_v11 = vrot.slane %v165_v3, 2  ;;  %v49_v15 = vmax.f32 %v48_v9, 1e-08  ;;  %p384_p6 = pnand %p383_p5, %p377_p2 }
  0x37   :  { %v147_v12 = vrot.slane %v146_v6, 1  ;;  %v154_v13 = vrot.slane %v153_v7, 1  ;;  %328 = vlog2.f32 %v47_v14  ;;  %v51_v32 = vsub.f32 1.0, %v47_v14  ;;  %v139_v56 = vld [vmem:[#allocation2 + $0x10] sm:$0xe0] }
  0x38   :  { %v160_v16 = vmax.f32 %v158_v1, %v159_v10  ;;  %v167_v17 = vmax.f32 %v165_v3, %v166_v11  ;;  %v50_v23 = vmin.f32 %v49_v15, 1.0  ;;  %v59_v33 = vsub.f32 1.0, %v455_v5  ;;  %v140_v59 = vld [vmem:[#allocation2 + $0x18] sm:$0xe0] }
  0x39   :  { %v148_v19 = vmax.f32 %v146_v6, %v147_v12  ;;  %v155_v20 = vmax.f32 %v153_v7, %v154_v13  ;;  %v54_v47 = vmul.f32 %v51_v32, %v51_v32  ;;  %v218_v6 = vrot.slane %v137_v50, 5 }
  0x3a   :  { %v161_v21 = vrot.slane %v160_v16, 1  ;;  %v168_v22 = vrot.slane %v167_v17, 1  ;;  %v52_v38 = vsub.f32 1.0, %v50_v23  ;;  %330 = vlog2.f32 %v50_v23 }
  0x3b   :  { %vm171_vm2 = vcmp.eq.f32.partialorder %v463_v29, %v148_v19  ;;  %vm172_vm3 = vcmp.eq.f32.partialorder %v465_v30, %v155_v20  ;;  %v60_v54 = vmul.f32 0.25, %v59_v33  ;;  %v219_v7 = vrot.slane %v138_v51, 5 }
  0x3c   :  { %v162_v24 = vmax.f32 %v160_v16, %v161_v21  ;;  %v169_v25 = vmax.f32 %v167_v17, %v168_v22  ;;  %v178_v26 = vsel %vm171_vm2, %v176_v18, 3.0  ;;  %v179_v27 = vsel %vm172_vm3, %v176_v18, 3.0 }
  0x3d   :  { %v182_v28 = vsel %vm141_vm1, %v178_v26, inf  ;;  %v189_v31 = vsel %vm141_vm1, %v179_v27, inf  ;;  %v61_v55 = vmul.f32 %v52_v38, %v52_v38  ;;  %v220_v14 = vrot.slane %v139_v56, 5 }
  0x3e   :  { %vm173_vm4 = vcmp.eq.f32.partialorder %v467_v36, %v162_v24  ;;  %vm174_vm5 = vcmp.eq.f32.partialorder %v469_v37, %v169_v25  ;;  %v183_v34 = vrot.slane %v182_v28, 4  ;;  %v190_v29 = vrot.slane %v189_v31, 4 }
  0x3f   :  { %v180_v35 = vsel %vm173_vm4, %v176_v18, 3.0  ;;  %v181_v30 = vsel %vm174_vm5, %v176_v18, 3.0  ;;  %v53_v36 = vmul.f32 0.75, %v455_v5  ;;  %v62_v10 = vmul.f32 %v61_v55, %v60_v54 }
  0x40   :  { %v184_v39 = vmin.f32 %v182_v28, %v183_v34  ;;  %v191_v40 = vmin.f32 %v189_v31, %v190_v29  ;;  %v196_v41 = vsel %vm141_vm1, %v180_v35, inf  ;;  %v203_v42 = vsel %vm141_vm1, %v181_v30, inf }
  0x41   :  { %v197_v43 = vrot.slane %v196_v41, 4  ;;  %v204_v44 = vrot.slane %v203_v42, 4  ;;  %v329_v49 = vpop.eup %328  ;;  %v55_v62 = vmul.f32 %v54_v47, %v53_v36  ;;  %v221_v15 = vrot.slane %v140_v59, 5 }
  0x42   :  { %v185_v45 = vrot.slane %v184_v39, 2  ;;  %v192_v46 = vrot.slane %v191_v40, 2  ;;  %v57_v63 = vmul.f32 0.6931472, %v329_v49  ;;  %vm502_vm11 = vcmp.lt.s32.totalorder %v86_v0, 512 }
  0x43   :  { %v198_v37 = vmin.f32 %v196_v41, %v197_v43  ;;  %v205_v48 = vmin.f32 %v203_v42, %v204_v44  ;;  %v302_v41 = vld [vmem:[#allocation7] ss:$8 sm:$0xf] }
  0x44   :  { %v186_v52 = vmin.f32 %v184_v39, %v185_v45  ;;  %v193_v53 = vmin.f32 %v191_v40, %v192_v46  ;;  %v331_v11 = vpop.eup %330  ;;  %v58_v16 = vmul.f32 %v57_v63, %v55_v62 }
  0x45   :  { %v199_v57 = vrot.slane %v198_v37, 2  ;;  %v206_v58 = vrot.slane %v205_v48, 2  ;;  %v64_v17 = vmul.f32 0.6931472, %v331_v11 }
  0x46   :  { %v187_v60 = vrot.slane %v186_v52, 1  ;;  %v194_v61 = vrot.slane %v193_v53, 1  ;;  %v294_v11 = vld [vmem:[#allocation7 + $0x5] ss:$8 sm:$0xf] }
  0x47   :  { %v200_v1 = vmin.f32 %v198_v37, %v199_v57  ;;  %v207_v3 = vmin.f32 %v205_v48, %v206_v58  ;;  %v65_v24 = vmul.f32 %v64_v17, %v62_v10 }
  0x48   :  { %v188_v8 = vmin.f32 %v186_v52, %v187_v60  ;;  %v195_v9 = vmin.f32 %v193_v53, %v194_v61 }
  0x49   :  { %v201_v12 = vrot.slane %v200_v1, 1  ;;  %v208_v13 = vrot.slane %v207_v3, 1  ;;  %v66_v31 = vadd.f32 %v65_v24, %v58_v16 }
  0x4a   :  { %vm210_vm7 = vcmp.eq.f32.partialorder %v480_v4, %v188_v8  ;;  %vm211_vm8 = vcmp.eq.f32.partialorder %v480_v4, %v195_v9 }
  0x4b   :  { %v202_v18 = vmin.f32 %v200_v1, %v201_v12  ;;  %v209_v19 = vmin.f32 %v207_v3, %v208_v13  ;;  %v226_v20 = vsel %vm210_vm7, %v218_v6, 0.0  ;;  %v227_v21 = vsel %vm211_vm8, %v219_v7, 0.0 }
  0x4c   :  { %v231_v22 = vsel %vm230_vm6, %v226_v20, 0.0  ;;  %v238_v23 = vsel %vm230_vm6, %v227_v21, 0.0  ;;  %v67_v38 = vsub.f32 0.0, %v66_v31 }
  0x4d   :  { %vm212_vm9 = vcmp.eq.f32.partialorder %v480_v4, %v202_v18  ;;  %vm213_vm10 = vcmp.eq.f32.partialorder %v480_v4, %v209_v19  ;;  %v232_v25 = vrot.slane %v231_v22, 4  ;;  %v239_v26 = vrot.slane %v238_v23, 4 }
  0x4e   :  { %v228_v27 = vsel %vm212_vm9, %v220_v14, 0.0  ;;  %v229_v28 = vsel %vm213_vm10, %v221_v15, 0.0  ;;  %v408_v4 = vmov 1966171168   ;;  %v68_v45 = vmul.f32 1.5, %v67_v38 }
  0x4f   :  { %v233_v32 = vadd.f32 %v232_v25, %v231_v22  ;;  %v240_v33 = vadd.f32 %v239_v26, %v238_v23  ;;  %v245_v34 = vsel %vm230_vm6, %v228_v27, 0.0  ;;  %v252_v29 = vsel %vm230_vm6, %v229_v28, 0.0 }
  0x50   :  { %v246_v35 = vrot.slane %v245_v34, 4  ;;  %v253_v30 = vrot.slane %v252_v29, 4  ;;  %v270_v44 = vunpack.c.l.s4 %v408_v4  ;;  %v303_v49 = vadd.f32 %v302_v41, %v68_v45 }
  0x51   :  { %v234_v39 = vrot.slane %v233_v32, 2  ;;  %v241_v40 = vrot.slane %v240_v33, 2 }
  0x52   :  { %v247_v42 = vadd.f32 %v246_v35, %v245_v34  ;;  %v254_v43 = vadd.f32 %v253_v30, %v252_v29  ;;  %v271_v54 = vunpack.c.0.s8 %v270_v44  ;;  %304 = vst.msk [vmem:[#allocation7] ss:$8 sm:$0xf] %vm502_vm11, %v303_v49 }
  0x53   :  { %v235_v46 = vadd.f32 %v234_v39, %v233_v32  ;;  %v242_v36 = vadd.f32 %v241_v40, %v240_v33 }
  0x54   :  { %v248_v37 = vrot.slane %v247_v42, 2  ;;  %v255_v48 = vrot.slane %v254_v43, 2  ;;  %v274_v62 = vsub.s32 %v271_v54, %v450_v2 }
  0x55   :  { %v236_v50 = vrot.slane %v235_v46, 1  ;;  %v243_v51 = vrot.slane %v242_v36, 1 }
  0x56   :  { %v249_v52 = vadd.f32 %v248_v37, %v247_v42  ;;  %v256_v53 = vadd.f32 %v255_v48, %v254_v43 }
  0x57   :  { %v237_v55 = vadd.f32 %v236_v50, %v235_v46  ;;  %v244_v56 = vadd.f32 %v243_v51, %v242_v36 }
  0x58   :  { %v250_v57 = vrot.slane %v249_v52, 1  ;;  %v257_v58 = vrot.slane %v256_v53, 1 }
  0x59   :  { %v259_v59 = vsub.f32 0.0, %v237_v55  ;;  %v260_v0 = vsub.f32 0.0, %v244_v56 }
  0x5a   :  { %v251_v60 = vadd.f32 %v250_v57, %v249_v52  ;;  %v258_v61 = vadd.f32 %v257_v58, %v256_v53 }
  0x5b   :  { %v267_v63 = vcombine.low %v259_v59, %v260_v0 }
  0x5c   :  { %v261_v1 = vsub.f32 0.0, %v251_v60  ;;  %v262_v3 = vsub.f32 0.0, %v258_v61 }
  0x5d   :  { %v275_v7 = vrot.slane %v267_v63, %v274_v62 }
  0x5e   :  { %v268_v6 = vcombine.low %v261_v1, %v262_v3 }
  0x60   :  { %v282_v8 = vrot.slane %v268_v6, %v274_v62 }
  0x62   :  { %v283_v9 = vcombine.low %v275_v7, %v282_v8 }
  0x64   :  { %v290_v10 = vrot.slane %v283_v9, %v274_v62 }
  0x66   :  { %v292_v12 = vmul.f32 %v290_v10, %v455_v5 }
  0x68   :  { %v295_v13 = vadd.f32 %v294_v11, %v292_v12 }
  0x6a   :  { %300 = vst.msk [vmem:[#allocation7 + $0x5] ss:$8 sm:$0xf] %vm502_vm11, %v295_v13 }
  0x6b   :  { %387 = shalt.err (!%p384_p6)
}
  0x6c   :  { %s388_s8 = scalar_lea.hbm %s526_s2, 512 }
  0x6d   :  { %p389_p7 = scmp.ne.s32.totalorder %s526_s2, %s388_s8  ;;  %p392_p8 = scmp.lt.u32.totalorder %s388_s8, %s526_s2 }
  0x6f   :  { %p394_p9 = pnand %p392_p8, %p389_p7 }
  0x71   :  { %397 = shalt.err (!%p394_p9)
}
  0x72   :  { %315 = dma.vmem_to_hbm [thread:$0]  %s313_s4, 512, %s526_s2, [#allocation4]  }
  0x73   :  { %402 = dma.done.wait [#allocation4], 512  }
  0x74   :  { %403 = vsyncadd [#allocation4], 4294966784 }
  0x75   :  { %319 = vsyncpa [#allocation3], 1 }
  0x76   :  { %320 = vsyncpa [#allocation6], 1 }
  0x77   :  { %321 = vsyncpa [#allocation4], 1 }

</bundles_post_ra>
